<compile_context>
chip_gen: v7x
topology: tpu7x:2x2x1
jax: 0.10.0
libtpu: 0.0.40
codegen_flags: <defaults>
</compile_context>

<pallas_src>
import functools

import jax
import jax.numpy as jnp
from jax.experimental import pallas as pl
from jax.experimental.pallas import tpu as pltpu

_LANE = 128          # vreg lane width (last tile dim)
_SUBLANE = 8         # f32 sublane quantum (second-to-last tile dim)
_MAX_TILE_ROWS = 512 # big tiles amortize the ~0.35us per-grid-step cost


def _cdiv(a, b):
    return (a + b - 1) // b


def _round_up(x, m):
    return ((x + m - 1) // m) * m


def _num_tensorcores_per_chip():
    """2 on v7x-class chips (where a megacore split can pay off), else 1."""
    try:
        kind = jax.devices()[0].device_kind.lower()
    except Exception:
        return 1
    return 2 if ("v7" in kind or "7x" in kind) else 1


# ---------------------------------------------------------------------------
# One-time parameter preparation (hoisted out of the per-call path).
# ---------------------------------------------------------------------------
def prepare_params(params):
    """Pads interior feature dims to 128 lanes and casts weights to bf16.

    params: list of (W, b) with W shaped (in, out) and b shaped (out,) or
            (1, out) (transpose of nn.Linear's weight layout; same semantics).
    Returns a flat tuple (w0, b0, ..., w_out, b_out).  Call ONCE and reuse --
    re-padding / re-casting every forward was the wrapper cost flagged in the
    perf review.

    Zero padding is exact: zero weight rows/cols + zero biases keep padded
    lanes identically 0 through every Linear+ReLU.  The input (ob_dim) and
    output (ac_dim) edges are left unpadded so the HBM-streamed obs / out
    arrays carry no wasted lanes.
    """
    dims = [params[0][0].shape[0]] + [w.shape[1] for w, _ in params]
    dims_p = list(dims)
    for i in range(1, len(dims) - 1):               # interior dims only
        dims_p[i] = _round_up(dims[i], _LANE)

    flat = []
    for li, (w, b) in enumerate(params):
        din, dout = w.shape
        din_p, dout_p = dims_p[li], dims_p[li + 1]
        w_p = jnp.zeros((din_p, dout_p), jnp.bfloat16)
        w_p = w_p.at[:din, :dout].set(w.astype(jnp.bfloat16))
        b_p = jnp.zeros((1, dout_p), jnp.float32)
        b_p = b_p.at[:, :dout].set(jnp.reshape(b, (1, dout)).astype(jnp.float32))
        flat.extend([w_p, b_p])
    return tuple(flat)


# ---------------------------------------------------------------------------
# Kernel: fused (Linear + ReLU) x n_hidden, Linear + Tanh, for one batch tile.
# ---------------------------------------------------------------------------
def _mlp_kernel(x_ref, *refs, n_hidden_layers):
    out_ref = refs[-1]
    param_refs = refs[:-1]

    # bf16 lhs feeds the MXU at its bf16 rate; the cast happens in-kernel so
    # the wrapper never materializes a separate bf16 copy of obs in HBM.
    h = x_ref[...].astype(jnp.bfloat16)

    for layer in range(n_hidden_layers):
        w = param_refs[2 * layer][...]            # bf16 (d_in, d_out)
        b = param_refs[2 * layer + 1][...]        # f32  (1, d_out)
        y = jnp.dot(h, w, preferred_element_type=jnp.float32)
        # bias + ReLU in f32 on the VPU (v5e-safe); store bf16 so the live
        # activation for the next layer's dot is half the bytes / vregs.
        h = jnp.maximum(y + b, 0.0).astype(jnp.bfloat16)

    w_out = param_refs[-2][...]
    b_out = param_refs[-1][...]
    y = jnp.dot(h, w_out, preferred_element_type=jnp.float32)
    out_ref[...] = jnp.tanh(y + b_out).astype(out_ref.dtype)   # tanh -> EUP


# ---------------------------------------------------------------------------
# Wrapper
# ---------------------------------------------------------------------------
def mlp_deterministic_policy_forward(obs, prepared_params, *, tile_batch=None,
                                     vmem_limit_bytes=None):
    """obs: (batch, ob_dim); prepared_params: output of prepare_params()."""
    flat = tuple(prepared_params)
    assert len(flat) >= 4 and len(flat) % 2 == 0
    n_hidden = len(flat) // 2 - 1
    ob_dim = flat[0].shape[0]
    ac_dim = flat[-2].shape[1]
    batch = obs.shape[0]
    assert obs.shape == (batch, ob_dim)

    # ---- batch tiling ------------------------------------------------------
    if tile_batch is None:
        num_steps = _cdiv(batch, _MAX_TILE_ROWS)
        # Only split a <=512-row batch when there are 2 TensorCores (v7x) and
        # enough rows that per-core work beats the fixed per-step overhead.
        if num_steps == 1 and batch >= 256 and _num_tensorcores_per_chip() >= 2:
            num_steps = 2
        if num_steps == 1:
            tb = batch                              # full dim -> no padding at all
        else:
            tb = _round_up(_cdiv(batch, num_steps), _SUBLANE)
    else:
        tb = min(int(tile_batch), batch)
        if tb < batch:
            tb = _round_up(tb, _SUBLANE)
    grid = (_cdiv(batch, tb),)

    # ---- VMEM budget -------------------------------------------------------
    if vmem_limit_bytes is None:
        param_bytes = sum(int(a.size) * a.dtype.itemsize for a in flat)
        hidden_dims = [flat[2 * i].shape[1] for i in range(n_hidden)] or [ob_dim]
        act_bytes = tb * max(hidden_dims) * 6                 # f32 y + bf16 h
        io_bytes = 2 * tb * (ob_dim * obs.dtype.itemsize + ac_dim * 4)
        need = 2 * param_bytes + act_bytes + io_bytes + (2 << 20)
        if need > (16 << 20):          # v5e scoped default is only 16 MiB
            vmem_limit_bytes = min(need, 48 << 20)   # stay under v7x 64 MiB physical
    # TODO(synk): if the resident bf16 weights alone approach ~48 MiB (v7x has
    # only 64 MiB physical VMEM), stream weights layer-by-layer with
    # pltpu.emit_pipeline / make_async_copy instead of keeping all layers resident.

    kernel = functools.partial(_mlp_kernel, n_hidden_layers=n_hidden)

    def build(single_buffered_weights):
        def w_spec(shape):
            if single_buffered_weights:
                # Constant index map -> the block never moves; one buffer
                # suffices (default double-buffering would just reserve a dead
                # second copy of every weight in VMEM).
                return pl.BlockSpec(shape, lambda i: (0, 0),
                                    pipeline_mode=pl.Buffered(1))
            return pl.BlockSpec(shape, lambda i: (0, 0))

        in_specs = [pl.BlockSpec((tb, ob_dim), lambda i: (i, 0))]
        in_specs += [w_spec(a.shape) for a in flat]
        out_spec = pl.BlockSpec((tb, ac_dim), lambda i: (i, 0))

        return pl.pallas_call(
            kernel,
            out_shape=jax.ShapeDtypeStruct((batch, ac_dim), jnp.float32),
            grid_spec=pl.GridSpec(grid=grid, in_specs=in_specs,
                                  out_specs=out_spec),
            compiler_params=pltpu.CompilerParams(
                dimension_semantics=("parallel",),
                vmem_limit_bytes=vmem_limit_bytes,
            ),
        )

    try:
        return build(True)(obs, *flat)
    except Exception:
        # pl.Buffered(1) rejected by this JAX/Mosaic version -> fall back to
        # default double-buffered weight specs (identical results, more VMEM).
        return build(False)(obs, *flat)


# ---------------------------------------------------------------------------
# Parameter init + pure-JAX reference
# ---------------------------------------------------------------------------
def init_mlp_params(key, ob_dim, ac_dim, n_layers, size):
    """Deterministic parameter init (PyTorch-Linear-like uniform bounds)."""
    dims = [ob_dim] + [size] * n_layers + [ac_dim]
    params = []
    for i in range(len(dims) - 1):
        fan_in, fan_out = dims[i], dims[i + 1]
        key, wk, bk = jax.random.split(key, 3)
        bound = 1.0 / jnp.sqrt(jnp.float32(fan_in))
        w = jax.random.uniform(wk, (fan_in, fan_out), jnp.float32, -bound, bound)
        b = jax.random.uniform(bk, (1, fan_out), jnp.float32, -bound, bound)
        params.append((w, b))
    return params


def reference_forward(obs, params):
    """Pure-JAX f32 reference (same semantics as the PyTorch Sequential)."""
    h = obs
    for w, b in params[:-1]:
        h = jnp.maximum(h @ w + b, 0.0)
    w, b = params[-1]
    return jnp.tanh(h @ w + b)


if __name__ == "__main__":
    # Small shapes consistent with the module: batch=8, ob_dim=16,
    # n_layers=2 hidden layers of size=32, ac_dim=4 (continuous policy).
    batch, ob_dim, ac_dim, n_layers, size = 8, 16, 4, 2, 32

    key = jax.random.PRNGKey(0)
    key, obs_key = jax.random.split(key)
    obs = jax.random.normal(obs_key, (batch, ob_dim), jnp.float32)

    params = init_mlp_params(key, ob_dim, ac_dim, n_layers, size)
    prepared = prepare_params(params)          # one-time pad + bf16 cast

    out = mlp_deterministic_policy_forward(obs, prepared)
    out = jax.block_until_ready(out)

    ref = reference_forward(obs, params)
    assert out.shape == (batch, ac_dim)
    # bf16 weights/activations in the kernel vs f32 reference -> loose tol.
    assert jnp.allclose(out, ref, atol=3e-2, rtol=3e-2), "mismatch vs reference"

    print("KERNEL_OK")
</pallas_src>

<mosaic_0001>
module attributes {stable_mosaic.version = 11 : i64} {
  func.func @_mlp_kernel(%arg0: i32, %arg1: memref<8x16xf32, #tpu.memory_space<vmem>>, %arg2: memref<16x128xbf16, #tpu.memory_space<vmem>>, %arg3: memref<1x128xf32, #tpu.memory_space<vmem>>, %arg4: memref<128x128xbf16, #tpu.memory_space<vmem>>, %arg5: memref<1x128xf32, #tpu.memory_space<vmem>>, %arg6: memref<128x4xbf16, #tpu.memory_space<vmem>>, %arg7: memref<1x4xf32, #tpu.memory_space<vmem>>, %arg8: memref<8x4xf32, #tpu.memory_space<vmem>>) attributes {dimension_semantics = [#tpu.dimension_semantics<parallel>], iteration_bounds = array<i64: 1>, scalar_prefetch = 0 : i64, scratch_operands = 0 : i64, tpu.core_type = #tpu.core_type<tc>, window_params = [{transform_indices = @transform_0, window_bounds = array<i64: 8, 16>}, {pipeline_mode = #tpu.pipeline_mode<synchronous>, transform_indices = @transform_1, window_bounds = array<i64: 16, 128>}, {pipeline_mode = #tpu.pipeline_mode<synchronous>, transform_indices = @transform_2, window_bounds = array<i64: 1, 128>}, {pipeline_mode = #tpu.pipeline_mode<synchronous>, transform_indices = @transform_3, window_bounds = array<i64: 128, 128>}, {pipeline_mode = #tpu.pipeline_mode<synchronous>, transform_indices = @transform_4, window_bounds = array<i64: 1, 128>}, {pipeline_mode = #tpu.pipeline_mode<synchronous>, transform_indices = @transform_5, window_bounds = array<i64: 128, 4>}, {pipeline_mode = #tpu.pipeline_mode<synchronous>, transform_indices = @transform_6, window_bounds = array<i64: 1, 4>}, {transform_indices = @transform_7, window_bounds = array<i64: 8, 4>}]} {
    %c0 = arith.constant 0 : index
    %c0_0 = arith.constant 0 : index
    %0 = vector.load %arg1[%c0, %c0_0] : memref<8x16xf32, #tpu.memory_space<vmem>>, vector<8x16xf32>
    %1 = arith.truncf %0 : vector<8x16xf32> to vector<8x16xbf16>
    %c0_1 = arith.constant 0 : index
    %c0_2 = arith.constant 0 : index
    %2 = vector.load %arg2[%c0_1, %c0_2] : memref<16x128xbf16, #tpu.memory_space<vmem>>, vector<16x128xbf16>
    %c0_3 = arith.constant 0 : index
    %c0_4 = arith.constant 0 : index
    %3 = vector.load %arg3[%c0_3, %c0_4] : memref<1x128xf32, #tpu.memory_space<vmem>>, vector<1x128xf32>
    %cst = arith.constant dense<0.000000e+00> : vector<8x128xf32>
    %4 = tpu.matmul %1, %2, %cst {dimension_numbers = #tpu.dot_dimension_numbers<[1], [0], [0], [1], [0, 0, 1, 1], [], []>} : vector<8x16xbf16>, vector<16x128xbf16>, vector<8x128xf32> -> vector<8x128xf32>
    %5 = vector.broadcast %3 : vector<1x128xf32> to vector<8x128xf32>
    %6 = arith.addf %4, %5 : vector<8x128xf32>
    %cst_5 = arith.constant 0.000000e+00 : f32
    %7 = vector.broadcast %cst_5 : f32 to vector<8x128xf32>
    %8 = arith.maximumf %6, %7 : vector<8x128xf32>
    %9 = arith.truncf %8 : vector<8x128xf32> to vector<8x128xbf16>
    %c0_6 = arith.constant 0 : index
    %c0_7 = arith.constant 0 : index
    %10 = vector.load %arg4[%c0_6, %c0_7] : memref<128x128xbf16, #tpu.memory_space<vmem>>, vector<128x128xbf16>
    %c0_8 = arith.constant 0 : index
    %c0_9 = arith.constant 0 : index
    %11 = vector.load %arg5[%c0_8, %c0_9] : memref<1x128xf32, #tpu.memory_space<vmem>>, vector<1x128xf32>
    %cst_10 = arith.constant dense<0.000000e+00> : vector<8x128xf32>
    %12 = tpu.matmul %9, %10, %cst_10 {dimension_numbers = #tpu.dot_dimension_numbers<[1], [0], [0], [1], [0, 0, 1, 1], [], []>} : vector<8x128xbf16>, vector<128x128xbf16>, vector<8x128xf32> -> vector<8x128xf32>
    %13 = vector.broadcast %11 : vector<1x128xf32> to vector<8x128xf32>
    %14 = arith.addf %12, %13 : vector<8x128xf32>
    %cst_11 = arith.constant 0.000000e+00 : f32
    %15 = vector.broadcast %cst_11 : f32 to vector<8x128xf32>
    %16 = arith.maximumf %14, %15 : vector<8x128xf32>
    %17 = arith.truncf %16 : vector<8x128xf32> to vector<8x128xbf16>
    %c0_12 = arith.constant 0 : index
    %c0_13 = arith.constant 0 : index
    %18 = vector.load %arg6[%c0_12, %c0_13] : memref<128x4xbf16, #tpu.memory_space<vmem>>, vector<128x4xbf16>
    %c0_14 = arith.constant 0 : index
    %c0_15 = arith.constant 0 : index
    %19 = vector.load %arg7[%c0_14, %c0_15] : memref<1x4xf32, #tpu.memory_space<vmem>>, vector<1x4xf32>
    %cst_16 = arith.constant dense<0.000000e+00> : vector<8x4xf32>
    %20 = tpu.matmul %17, %18, %cst_16 {dimension_numbers = #tpu.dot_dimension_numbers<[1], [0], [0], [1], [0, 0, 1, 1], [], []>} : vector<8x128xbf16>, vector<128x4xbf16>, vector<8x4xf32> -> vector<8x4xf32>
    %21 = vector.broadcast %19 : vector<1x4xf32> to vector<8x4xf32>
    %22 = arith.addf %20, %21 : vector<8x4xf32>
    %23 = math.tanh %22 : vector<8x4xf32>
    %c0_17 = arith.constant 0 : index
    %c0_18 = arith.constant 0 : index
    %24 = vector.load %arg8[%c0_17, %c0_18] : memref<8x4xf32, #tpu.memory_space<vmem>>, vector<8x4xf32>
    tpu.vector_store %arg8[%c0_17, %c0_18], %23 {strides = array<i32>} : memref<8x4xf32, #tpu.memory_space<vmem>>, vector<8x4xf32>,
    return
  }
  func.func @transform_0(%arg0: i32) -> (i32, i32) {
    %c0_i32 = arith.constant 0 : i32
    %c0_i32_0 = arith.constant 0 : i32
    return %arg0, %c0_i32 : i32, i32
  }
  func.func @transform_1(%arg0: i32) -> (i32, i32) {
    %c0_i32 = arith.constant 0 : i32
    %c0_i32_0 = arith.constant 0 : i32
    %c0_i32_1 = arith.constant 0 : i32
    return %c0_i32, %c0_i32_0 : i32, i32
  }
  func.func @transform_2(%arg0: i32) -> (i32, i32) {
    %c0_i32 = arith.constant 0 : i32
    %c0_i32_0 = arith.constant 0 : i32
    %c0_i32_1 = arith.constant 0 : i32
    return %c0_i32, %c0_i32_0 : i32, i32
  }
  func.func @transform_3(%arg0: i32) -> (i32, i32) {
    %c0_i32 = arith.constant 0 : i32
    %c0_i32_0 = arith.constant 0 : i32
    %c0_i32_1 = arith.constant 0 : i32
    return %c0_i32, %c0_i32_0 : i32, i32
  }
  func.func @transform_4(%arg0: i32) -> (i32, i32) {
    %c0_i32 = arith.constant 0 : i32
    %c0_i32_0 = arith.constant 0 : i32
    %c0_i32_1 = arith.constant 0 : i32
    return %c0_i32, %c0_i32_0 : i32, i32
  }
  func.func @transform_5(%arg0: i32) -> (i32, i32) {
    %c0_i32 = arith.constant 0 : i32
    %c0_i32_0 = arith.constant 0 : i32
    %c0_i32_1 = arith.constant 0 : i32
    return %c0_i32, %c0_i32_0 : i32, i32
  }
  func.func @transform_6(%arg0: i32) -> (i32, i32) {
    %c0_i32 = arith.constant 0 : i32
    %c0_i32_0 = arith.constant 0 : i32
    %c0_i32_1 = arith.constant 0 : i32
    return %c0_i32, %c0_i32_0 : i32, i32
  }
  func.func @transform_7(%arg0: i32) -> (i32, i32) {
    %c0_i32 = arith.constant 0 : i32
    %c0_i32_0 = arith.constant 0 : i32
    return %arg0, %c0_i32 : i32, i32
  }
}

module attributes {stable_mosaic.version = 11 : i64} {
  func.func @_mlp_kernel(%arg0: i32, %arg1: memref<8x16xf32, #tpu.memory_space<vmem>>, %arg2: memref<16x128xbf16, #tpu.memory_space<vmem>>, %arg3: memref<1x128xf32, #tpu.memory_space<vmem>>, %arg4: memref<128x128xbf16, #tpu.memory_space<vmem>>, %arg5: memref<1x128xf32, #tpu.memory_space<vmem>>, %arg6: memref<128x4xbf16, #tpu.memory_space<vmem>>, %arg7: memref<1x4xf32, #tpu.memory_space<vmem>>, %arg8: memref<8x4xf32, #tpu.memory_space<vmem>>) attributes {dimension_semantics = [#tpu.dimension_semantics<parallel>], iteration_bounds = array<i64: 1>, scalar_prefetch = 0 : i64, scratch_operands = 0 : i64, tpu.core_type = #tpu.core_type<tc>, window_params = [{transform_indices = @transform_0, window_bounds = array<i64: 8, 16>}, {pipeline_mode = #tpu.pipeline_mode<synchronous>, transform_indices = @transform_1, window_bounds = array<i64: 16, 128>}, {pipeline_mode = #tpu.pipeline_mode<synchronous>, transform_indices = @transform_2, window_bounds = array<i64: 1, 128>}, {pipeline_mode = #tpu.pipeline_mode<synchronous>, transform_indices = @transform_3, window_bounds = array<i64: 128, 128>}, {pipeline_mode = #tpu.pipeline_mode<synchronous>, transform_indices = @transform_4, window_bounds = array<i64: 1, 128>}, {pipeline_mode = #tpu.pipeline_mode<synchronous>, transform_indices = @transform_5, window_bounds = array<i64: 128, 4>}, {pipeline_mode = #tpu.pipeline_mode<synchronous>, transform_indices = @transform_6, window_bounds = array<i64: 1, 4>}, {transform_indices = @transform_7, window_bounds = array<i64: 8, 4>}]} {
    %c0 = arith.constant 0 : index
    %c0_0 = arith.constant 0 : index
    %0 = vector.load %arg1[%c0, %c0_0] : memref<8x16xf32, #tpu.memory_space<vmem>>, vector<8x16xf32>
    %1 = arith.truncf %0 : vector<8x16xf32> to vector<8x16xbf16>
    %c0_1 = arith.constant 0 : index
    %c0_2 = arith.constant 0 : index
    %2 = vector.load %arg2[%c0_1, %c0_2] : memref<16x128xbf16, #tpu.memory_space<vmem>>, vector<16x128xbf16>
    %c0_3 = arith.constant 0 : index
    %c0_4 = arith.constant 0 : index
    %3 = vector.load %arg3[%c0_3, %c0_4] : memref<1x128xf32, #tpu.memory_space<vmem>>, vector<1x128xf32>
    %cst = arith.constant dense<0.000000e+00> : vector<8x128xf32>
    %4 = tpu.matmul %1, %2, %cst {dimension_numbers = #tpu.dot_dimension_numbers<[1], [0], [0], [1], [0, 0, 1, 1], [], []>} : vector<8x16xbf16>, vector<16x128xbf16>, vector<8x128xf32> -> vector<8x128xf32>
    %5 = vector.broadcast %3 : vector<1x128xf32> to vector<8x128xf32>
    %6 = arith.addf %4, %5 : vector<8x128xf32>
    %cst_5 = arith.constant 0.000000e+00 : f32
    %7 = vector.broadcast %cst_5 : f32 to vector<8x128xf32>
    %8 = arith.maximumf %6, %7 : vector<8x128xf32>
    %9 = arith.truncf %8 : vector<8x128xf32> to vector<8x128xbf16>
    %c0_6 = arith.constant 0 : index
    %c0_7 = arith.constant 0 : index
    %10 = vector.load %arg4[%c0_6, %c0_7] : memref<128x128xbf16, #tpu.memory_space<vmem>>, vector<128x128xbf16>
    %c0_8 = arith.constant 0 : index
    %c0_9 = arith.constant 0 : index
    %11 = vector.load %arg5[%c0_8, %c0_9] : memref<1x128xf32, #tpu.memory_space<vmem>>, vector<1x128xf32>
    %cst_10 = arith.constant dense<0.000000e+00> : vector<8x128xf32>
    %12 = tpu.matmul %9, %10, %cst_10 {dimension_numbers = #tpu.dot_dimension_numbers<[1], [0], [0], [1], [0, 0, 1, 1], [], []>} : vector<8x128xbf16>, vector<128x128xbf16>, vector<8x128xf32> -> vector<8x128xf32>
    %13 = vector.broadcast %11 : vector<1x128xf32> to vector<8x128xf32>
    %14 = arith.addf %12, %13 : vector<8x128xf32>
    %cst_11 = arith.constant 0.000000e+00 : f32
    %15 = vector.broadcast %cst_11 : f32 to vector<8x128xf32>
    %16 = arith.maximumf %14, %15 : vector<8x128xf32>
    %17 = arith.truncf %16 : vector<8x128xf32> to vector<8x128xbf16>
    %c0_12 = arith.constant 0 : index
    %c0_13 = arith.constant 0 : index
    %18 = vector.load %arg6[%c0_12, %c0_13] : memref<128x4xbf16, #tpu.memory_space<vmem>>, vector<128x4xbf16>
    %c0_14 = arith.constant 0 : index
    %c0_15 = arith.constant 0 : index
    %19 = vector.load %arg7[%c0_14, %c0_15] : memref<1x4xf32, #tpu.memory_space<vmem>>, vector<1x4xf32>
    %cst_16 = arith.constant dense<0.000000e+00> : vector<8x4xf32>
    %20 = tpu.matmul %17, %18, %cst_16 {dimension_numbers = #tpu.dot_dimension_numbers<[1], [0], [0], [1], [0, 0, 1, 1], [], []>} : vector<8x128xbf16>, vector<128x4xbf16>, vector<8x4xf32> -> vector<8x4xf32>
    %21 = vector.broadcast %19 : vector<1x4xf32> to vector<8x4xf32>
    %22 = arith.addf %20, %21 : vector<8x4xf32>
    %23 = math.tanh %22 : vector<8x4xf32>
    %c0_17 = arith.constant 0 : index
    %c0_18 = arith.constant 0 : index
    %24 = vector.load %arg8[%c0_17, %c0_18] : memref<8x4xf32, #tpu.memory_space<vmem>>, vector<8x4xf32>
    tpu.vector_store %arg8[%c0_17, %c0_18], %23 {strides = array<i32>} : memref<8x4xf32, #tpu.memory_space<vmem>>, vector<8x4xf32>,
    return
  }
  func.func @transform_0(%arg0: i32) -> (i32, i32) {
    %c0_i32 = arith.constant 0 : i32
    %c0_i32_0 = arith.constant 0 : i32
    return %arg0, %c0_i32 : i32, i32
  }
  func.func @transform_1(%arg0: i32) -> (i32, i32) {
    %c0_i32 = arith.constant 0 : i32
    %c0_i32_0 = arith.constant 0 : i32
    %c0_i32_1 = arith.constant 0 : i32
    return %c0_i32, %c0_i32_0 : i32, i32
  }
  func.func @transform_2(%arg0: i32) -> (i32, i32) {
    %c0_i32 = arith.constant 0 : i32
    %c0_i32_0 = arith.constant 0 : i32
    %c0_i32_1 = arith.constant 0 : i32
    return %c0_i32, %c0_i32_0 : i32, i32
  }
  func.func @transform_3(%arg0: i32) -> (i32, i32) {
    %c0_i32 = arith.constant 0 : i32
    %c0_i32_0 = arith.constant 0 : i32
    %c0_i32_1 = arith.constant 0 : i32
    return %c0_i32, %c0_i32_0 : i32, i32
  }
  func.func @transform_4(%arg0: i32) -> (i32, i32) {
    %c0_i32 = arith.constant 0 : i32
    %c0_i32_0 = arith.constant 0 : i32
    %c0_i32_1 = arith.constant 0 : i32
    return %c0_i32, %c0_i32_0 : i32, i32
  }
  func.func @transform_5(%arg0: i32) -> (i32, i32) {
    %c0_i32 = arith.constant 0 : i32
    %c0_i32_0 = arith.constant 0 : i32
    %c0_i32_1 = arith.constant 0 : i32
    return %c0_i32, %c0_i32_0 : i32, i32
  }
  func.func @transform_6(%arg0: i32) -> (i32, i32) {
    %c0_i32 = arith.constant 0 : i32
    %c0_i32_0 = arith.constant 0 : i32
    %c0_i32_1 = arith.constant 0 : i32
    return %c0_i32, %c0_i32_0 : i32, i32
  }
  func.func @transform_7(%arg0: i32) -> (i32, i32) {
    %c0_i32 = arith.constant 0 : i32
    %c0_i32_0 = arith.constant 0 : i32
    return %arg0, %c0_i32 : i32, i32
  }
}

</mosaic_0001>

<bundles_post_ra>
// kernel: tpu_custom_call.1
= control target key start
LH: loop header
LB: loop body
LE: loop exit
PB: predicated region body
PF: predicated region fallthrough
CT: control target
= control target key end

     0   :  { %12 = vsyncpa [#allocation3], 0  ;;  %s471_s24 = smov [#allocation2]   ;;  %s611_s0 = inlined_call_operand.vmem [shape: f32[8,16], index: 0, kind: input, shape index: {}]   ;;  %s612_s1 = inlined_call_operand.hbm [shape: bf16[16,128], index: 1, kind: input, shape index: {}]   ;;  %s613_s2 = inlined_call_operand.vmem [shape: f32[1,128], index: 2, kind: input, shape index: {}]   ;;  %s614_s3 = inlined_call_operand.vmem [shape: bf16[128,128], index: 3, kind: input, shape index: {}]   ;;  %s615_s4 = inlined_call_operand.vmem [shape: f32[1,128], index: 4, kind: input, shape index: {}]   ;;  %s616_s5 = inlined_call_operand.vmem [shape: bf16[128,4], index: 5, kind: input, shape index: {}]   ;;  %s617_s6 = inlined_call_operand.vmem [shape: f32[1,4], index: 6, kind: input, shape index: {}]   ;;  %s618_s7 = inlined_call_operand.vmem [shape: f32[8,4], index: 7, kind: output, shape index: {}]  }
   0x1   :  { %s20_s25 = sshll.u32 %s471_s24, 4  ;;  %s447_s28 = scalar_lea.hbm %s612_s1, 128  ;;  %s21_s25 = int_to_ptr.vmem [resolvable:$true] %s20_s25 }
   0x2   :  { %p448_p0 = scmp.ne.s32.totalorder %s612_s1, %s447_s28  ;;  %p451_p1 = scmp.lt.u32.totalorder %s447_s28, %s612_s1 }
   0x4   :  { %p453_p2 = pnand %p451_p1, %p448_p0 }
   0x6   :  { %456 = shalt.err (!%p453_p2)
}
   0x7   :  { %s457_s10 = scalar_lea.vmem %s21_s25, 128  ;;  %p462_p4 = scmp.lt.s32.totalorder %s21_s25, %s21_s25 }
   0x8   :  { %p458_p3 = scmp.ne.s32.totalorder %s21_s25, %s457_s10  ;;  %p463_p5 = scmp.lt.s32.totalorder %s457_s10, %s457_s10 }
   0xa   :  { %p464_p6 = por %p463_p5, %p462_p4 }
   0xc   :  { %p465_p7 = pnand %p464_p6, %p458_p3 }
   0xe   :  { %468 = shalt.err (!%p465_p7)
}
   0xf   :  { %s472_s11 = smov 64   ;;  %s473_s12 = smov 4  }
  0x10   :  { %26 = dma.hbm_to_vmem [thread:$0]  %s612_s1, 128, %s21_s25, [#allocation3], %s472_s11, %s472_s11, %s473_s12  }
  0x11   :  { %469 = dma.done.wait [#allocation3], 128  }
  0x12   :  { %470 = vsyncadd [#allocation3], 4294967168  ;;  %v474_v0 = vmov 0.0   ;;  %vm475_vm0 = vmmov 0   ;;  %v428_v1 = vld [vmem:[#allocation2] sm:$0xff]   ;;  %vm58_vm1 = vcmask 130048  }
  0x13   :  { %377 = vmatprep.subr.bf16.mxu0 %v474_v0  ;;  %379 = vmatprep.mubr.msk.bf16.mxu0 %vm475_vm0, %v474_v0  ;;  %v41_v2 = vld [vmem:[%s611_s0] sm:$0xff]  ;;  %v430_v5 = vld [vmem:[%s614_s3 + $0x8] sm:$0xff]   ;;  %v431_v6 = vld [vmem:[%s614_s3 + $0x10] sm:$0xff]   ;;  %vm329_vm2 = vcmask 31744  }
  0x14   :  { %383 = vmatprep.subr.bf16.mxu1 %v474_v0  ;;  %399 = vmatprep.mubr.msk.bf16.mxu1 %vm475_vm0, %v474_v0  ;;  %v42_v3 = vpack.c.bf16 %v41_v2, %v41_v2  ;;  %v429_v4 = vld [vmem:[%s614_s3] sm:$0xff]   ;;  %v432_v7 = vld [vmem:[%s614_s3 + $0x18] sm:$0xff]   ;;  %v434_v9 = vld [vmem:[%s614_s3 + $0x28] sm:$0xff]  }
  0x15   :  { %378 = vmatpush3.bf16.msra.mxu0 %v428_v1  ;;  %384 = vmatpush3.bf16.msra.mxu1 %v429_v4  ;;  %v433_v8 = vld [vmem:[%s614_s3 + $0x20] sm:$0xff]   ;;  %v435_v10 = vld [vmem:[%s614_s3 + $0x30] sm:$0xff]   ;;  %v436_v11 = vld [vmem:[%s614_s3 + $0x38] sm:$0xff]  }
  0x16   :  { %403 = vmatprep.subr.bf16.mxu0 %v474_v0  ;;  %385 = vmatprep.subr.bf16.mxu1 %v474_v0  ;;  %v437_v12 = vld [vmem:[%s616_s5] sm:$0xff]   ;;  %v438_v13 = vld [vmem:[%s616_s5 + $0x8] sm:$0xff]   ;;  %v439_v14 = vld [vmem:[%s616_s5 + $0x10] sm:$0xff]  }
  0x17   :  { %v440_v15 = vld [vmem:[%s616_s5 + $0x18] sm:$0xff]   ;;  %v441_v16 = vld [vmem:[%s616_s5 + $0x20] sm:$0xff]   ;;  %v442_v17 = vld [vmem:[%s616_s5 + $0x28] sm:$0xff]  }
  0x18   :  { %380 = vmatmul.mubr.msk.bf16.vlgmr.msra.gmra.mrb[0].mxu0 %vm58_vm1, %v42_v3  ;;  %v336_v18 = vld [vmem:[%s613_s2] ss:$0 sm:$0xff]  ;;  %v443_v26 = vld [vmem:[%s616_s5 + $0x30] sm:$0xff]   ;;  %v444_v27 = vld [vmem:[%s616_s5 + $0x38] sm:$0xff]  }
  0x19   :  { %419 = vmatprep.mubr.msk.bf16.mxu0 %vm475_vm0, %v474_v0  ;;  %386 = vmatpush3.bf16.msra.mxu1 %v430_v5  ;;  %v339_v28 = vld [vmem:[%s615_s4] ss:$0 sm:$0xff] }
  0x1a   :  { %387 = vmatprep.subr.bf16.mxu1 %v474_v0  ;;  %404 = vmatpush3.bf16.msra.mxu0 %v437_v12  ;;  %v348_v36 = vld [vmem:[%s617_s6] ss:$0 sm:$0xff] }
  0x1b   :  { %405 = vmatprep.subr.bf16.mxu0 %v474_v0 }
  0x1d   :  { %388 = vmatpush3.bf16.msra.mxu1 %v431_v6 }
  0x1e   :  { %389 = vmatprep.subr.bf16.mxu1 %v474_v0  ;;  %406 = vmatpush3.bf16.msra.mxu0 %v438_v13 }
  0x1f   :  { %407 = vmatprep.subr.bf16.mxu0 %v474_v0 }
  0x21   :  { %390 = vmatpush3.bf16.msra.mxu1 %v432_v7 }
  0x22   :  { %391 = vmatprep.subr.bf16.mxu1 %v474_v0  ;;  %408 = vmatpush3.bf16.msra.mxu0 %v439_v14 }
  0x23   :  { %409 = vmatprep.subr.bf16.mxu0 %v474_v0 }
  0x25   :  { %392 = vmatpush3.bf16.msra.mxu1 %v433_v8 }
  0x26   :  { %393 = vmatprep.subr.bf16.mxu1 %v474_v0  ;;  %410 = vmatpush3.bf16.msra.mxu0 %v440_v15 }
  0x27   :  { %411 = vmatprep.subr.bf16.mxu0 %v474_v0 }
  0x29   :  { %394 = vmatpush3.bf16.msra.mxu1 %v434_v9 }
  0x2a   :  { %395 = vmatprep.subr.bf16.mxu1 %v474_v0  ;;  %412 = vmatpush3.bf16.msra.mxu0 %v441_v16 }
  0x2b   :  { %413 = vmatprep.subr.bf16.mxu0 %v474_v0 }
  0x2d   :  { %396 = vmatpush3.bf16.msra.mxu1 %v435_v10 }
  0x2e   :  { %397 = vmatprep.subr.bf16.mxu1 %v474_v0  ;;  %414 = vmatpush3.bf16.msra.mxu0 %v442_v17 }
  0x2f   :  { %415 = vmatprep.subr.bf16.mxu0 %v474_v0 }
  0x31   :  { %398 = vmatpush3.bf16.msra.mxu1 %v436_v11 }
  0x32   :  { %416 = vmatpush3.bf16.msra.mxu0 %v443_v26 }
  0x33   :  { %417 = vmatprep.subr.bf16.mxu0 %v474_v0 }
  0x36   :  { %418 = vmatpush3.bf16.msra.mxu0 %v444_v27 }
  0xeb   :  { %v96_v19 = vpop.f32.mrb[0].mxu0 }
  0xec   :  { %v97_v20 = vadd.f32 %v336_v18, %v96_v19  ;;  %v381_v21 = vpop.f32.mrb[1].mxu0 }
  0xed   :  { %v99_v22 = vpop.f32.mrb[2].mxu0 }
  0xee   :  { %v102_v23 = vmax.f32 %v97_v20, 0.0  ;;  %v382_v24 = vpop.f32.mrb[3].mxu0 }
  0xf0   :  { %v103_v25 = vpack.c.bf16 %v102_v23, %v102_v23 }
  0xf2   :  { %400 = vmatmul.mubr.bf16.vlgmr.msra.gmra.mrb[0].mxu1 %v103_v25 }
 0x1c5   :  { %v209_v29 = vpop.f32.mrb[0].mxu1 }
 0x1c6   :  { %v210_v30 = vadd.f32 %v339_v28, %v209_v29  ;;  %v401_v31 = vpop.f32.mrb[1].mxu1 }
 0x1c7   :  { %v212_v32 = vpop.f32.mrb[2].mxu1 }
 0x1c8   :  { %v215_v33 = vmax.f32 %v210_v30, 0.0  ;;  %v402_v34 = vpop.f32.mrb[3].mxu1 }
 0x1ca   :  { %v216_v35 = vpack.c.bf16 %v215_v33, %v215_v33 }
 0x1cc   :  { %420 = vmatmul.mubr.bf16.vlgmr.msra.gmra.mrb[4].mxu0 %v216_v35 }
 0x29f   :  { %v322_v37 = vpop.f32.mrb[4].mxu0 }
 0x2a0   :  { %v323_v38 = vadd.f32 %v348_v36, %v322_v37  ;;  %v421_v39 = vpop.f32.mrb[5].mxu0 }
 0x2a1   :  { %v325_v40 = vpop.f32.mrb[6].mxu0 }
 0x2a2   :  { %445 = vtanh.f32 %v323_v38  ;;  %v422_v41 = vpop.f32.mrb[7].mxu0 }
 0x2ac   :  { %v446_v42 = vpop.eup %445 }
 0x2ad   :  { %330 = vst.msk [vmem:[%s618_s7] sm:$0xff] %vm329_vm2, %v446_v42 }
 0x2ae   :  { %335 = vsyncpa [#allocation3], 1 }

// kernel: tpu_custom_call.1
= control target key start
LH: loop header
LB: loop body
LE: loop exit
PB: predicated region body
PF: predicated region fallthrough
CT: control target
= control target key end

     0   :  { %12 = vsyncpa [#allocation3], 0  ;;  %s471_s24 = smov [#allocation2]   ;;  %s611_s0 = inlined_call_operand.vmem [shape: f32[8,16], index: 0, kind: input, shape index: {}]   ;;  %s612_s1 = inlined_call_operand.hbm [shape: bf16[16,128], index: 1, kind: input, shape index: {}]   ;;  %s613_s2 = inlined_call_operand.vmem [shape: f32[1,128], index: 2, kind: input, shape index: {}]   ;;  %s614_s3 = inlined_call_operand.vmem [shape: bf16[128,128], index: 3, kind: input, shape index: {}]   ;;  %s615_s4 = inlined_call_operand.vmem [shape: f32[1,128], index: 4, kind: input, shape index: {}]   ;;  %s616_s5 = inlined_call_operand.vmem [shape: bf16[128,4], index: 5, kind: input, shape index: {}]   ;;  %s617_s6 = inlined_call_operand.vmem [shape: f32[1,4], index: 6, kind: input, shape index: {}]   ;;  %s618_s7 = inlined_call_operand.vmem [shape: f32[8,4], index: 7, kind: output, shape index: {}]  }
   0x1   :  { %s20_s25 = sshll.u32 %s471_s24, 4  ;;  %s447_s28 = scalar_lea.hbm %s612_s1, 128  ;;  %s21_s25 = int_to_ptr.vmem [resolvable:$true] %s20_s25 }
   0x2   :  { %p448_p0 = scmp.ne.s32.totalorder %s612_s1, %s447_s28  ;;  %p451_p1 = scmp.lt.u32.totalorder %s447_s28, %s612_s1 }
   0x4   :  { %p453_p2 = pnand %p451_p1, %p448_p0 }
   0x6   :  { %456 = shalt.err (!%p453_p2)
}
   0x7   :  { %s457_s10 = scalar_lea.vmem %s21_s25, 128  ;;  %p462_p4 = scmp.lt.s32.totalorder %s21_s25, %s21_s25 }
   0x8   :  { %p458_p3 = scmp.ne.s32.totalorder %s21_s25, %s457_s10  ;;  %p463_p5 = scmp.lt.s32.totalorder %s457_s10, %s457_s10 }
   0xa   :  { %p464_p6 = por %p463_p5, %p462_p4 }
   0xc   :  { %p465_p7 = pnand %p464_p6, %p458_p3 }
   0xe   :  { %468 = shalt.err (!%p465_p7)
}
   0xf   :  { %s472_s11 = smov 64   ;;  %s473_s12 = smov 4  }
  0x10   :  { %26 = dma.hbm_to_vmem [thread:$0]  %s612_s1, 128, %s21_s25, [#allocation3], %s472_s11, %s472_s11, %s473_s12  }
  0x11   :  { %469 = dma.done.wait [#allocation3], 128  }
  0x12   :  { %470 = vsyncadd [#allocation3], 4294967168  ;;  %v474_v0 = vmov 0.0   ;;  %vm475_vm0 = vmmov 0   ;;  %v428_v1 = vld [vmem:[#allocation2] sm:$0xff]   ;;  %vm58_vm1 = vcmask 130048  }
  0x13   :  { %377 = vmatprep.subr.bf16.mxu0 %v474_v0  ;;  %379 = vmatprep.mubr.msk.bf16.mxu0 %vm475_vm0, %v474_v0  ;;  %v41_v2 = vld [vmem:[%s611_s0] sm:$0xff]  ;;  %v430_v5 = vld [vmem:[%s614_s3 + $0x8] sm:$0xff]   ;;  %v431_v6 = vld [vmem:[%s614_s3 + $0x10] sm:$0xff]   ;;  %vm329_vm2 = vcmask 31744  }
  0x14   :  { %383 = vmatprep.subr.bf16.mxu1 %v474_v0  ;;  %399 = vmatprep.mubr.msk.bf16.mxu1 %vm475_vm0, %v474_v0  ;;  %v42_v3 = vpack.c.bf16 %v41_v2, %v41_v2  ;;  %v429_v4 = vld [vmem:[%s614_s3] sm:$0xff]   ;;  %v432_v7 = vld [vmem:[%s614_s3 + $0x18] sm:$0xff]   ;;  %v434_v9 = vld [vmem:[%s614_s3 + $0x28] sm:$0xff]  }
  0x15   :  { %378 = vmatpush3.bf16.msra.mxu0 %v428_v1  ;;  %384 = vmatpush3.bf16.msra.mxu1 %v429_v4  ;;  %v433_v8 = vld [vmem:[%s614_s3 + $0x20] sm:$0xff]   ;;  %v435_v10 = vld [vmem:[%s614_s3 + $0x30] sm:$0xff]   ;;  %v436_v11 = vld [vmem:[%s614_s3 + $0x38] sm:$0xff]  }
  0x16   :  { %403 = vmatprep.subr.bf16.mxu0 %v474_v0  ;;  %385 = vmatprep.subr.bf16.mxu1 %v474_v0  ;;  %v437_v12 = vld [vmem:[%s616_s5] sm:$0xff]   ;;  %v438_v13 = vld [vmem:[%s616_s5 + $0x8] sm:$0xff]   ;;  %v439_v14 = vld [vmem:[%s616_s5 + $0x10] sm:$0xff]  }
  0x17   :  { %v440_v15 = vld [vmem:[%s616_s5 + $0x18] sm:$0xff]   ;;  %v441_v16 = vld [vmem:[%s616_s5 + $0x20] sm:$0xff]   ;;  %v442_v17 = vld [vmem:[%s616_s5 + $0x28] sm:$0xff]  }
  0x18   :  { %380 = vmatmul.mubr.msk.bf16.vlgmr.msra.gmra.mrb[0].mxu0 %vm58_vm1, %v42_v3  ;;  %v336_v18 = vld [vmem:[%s613_s2] ss:$0 sm:$0xff]  ;;  %v443_v26 = vld [vmem:[%s616_s5 + $0x30] sm:$0xff]   ;;  %v444_v27 = vld [vmem:[%s616_s5 + $0x38] sm:$0xff]  }
  0x19   :  { %419 = vmatprep.mubr.msk.bf16.mxu0 %vm475_vm0, %v474_v0  ;;  %386 = vmatpush3.bf16.msra.mxu1 %v430_v5  ;;  %v339_v28 = vld [vmem:[%s615_s4] ss:$0 sm:$0xff] }
  0x1a   :  { %387 = vmatprep.subr.bf16.mxu1 %v474_v0  ;;  %404 = vmatpush3.bf16.msra.mxu0 %v437_v12  ;;  %v348_v36 = vld [vmem:[%s617_s6] ss:$0 sm:$0xff] }
  0x1b   :  { %405 = vmatprep.subr.bf16.mxu0 %v474_v0 }
  0x1d   :  { %388 = vmatpush3.bf16.msra.mxu1 %v431_v6 }
  0x1e   :  { %389 = vmatprep.subr.bf16.mxu1 %v474_v0  ;;  %406 = vmatpush3.bf16.msra.mxu0 %v438_v13 }
  0x1f   :  { %407 = vmatprep.subr.bf16.mxu0 %v474_v0 }
  0x21   :  { %390 = vmatpush3.bf16.msra.mxu1 %v432_v7 }
  0x22   :  { %391 = vmatprep.subr.bf16.mxu1 %v474_v0  ;;  %408 = vmatpush3.bf16.msra.mxu0 %v439_v14 }
  0x23   :  { %409 = vmatprep.subr.bf16.mxu0 %v474_v0 }
  0x25   :  { %392 = vmatpush3.bf16.msra.mxu1 %v433_v8 }
  0x26   :  { %393 = vmatprep.subr.bf16.mxu1 %v474_v0  ;;  %410 = vmatpush3.bf16.msra.mxu0 %v440_v15 }
  0x27   :  { %411 = vmatprep.subr.bf16.mxu0 %v474_v0 }
  0x29   :  { %394 = vmatpush3.bf16.msra.mxu1 %v434_v9 }
  0x2a   :  { %395 = vmatprep.subr.bf16.mxu1 %v474_v0  ;;  %412 = vmatpush3.bf16.msra.mxu0 %v441_v16 }
  0x2b   :  { %413 = vmatprep.subr.bf16.mxu0 %v474_v0 }
  0x2d   :  { %396 = vmatpush3.bf16.msra.mxu1 %v435_v10 }
  0x2e   :  { %397 = vmatprep.subr.bf16.mxu1 %v474_v0  ;;  %414 = vmatpush3.bf16.msra.mxu0 %v442_v17 }
  0x2f   :  { %415 = vmatprep.subr.bf16.mxu0 %v474_v0 }
  0x31   :  { %398 = vmatpush3.bf16.msra.mxu1 %v436_v11 }
  0x32   :  { %416 = vmatpush3.bf16.msra.mxu0 %v443_v26 }
  0x33   :  { %417 = vmatprep.subr.bf16.mxu0 %v474_v0 }
  0x36   :  { %418 = vmatpush3.bf16.msra.mxu0 %v444_v27 }
  0xeb   :  { %v96_v19 = vpop.f32.mrb[0].mxu0 }
  0xec   :  { %v97_v20 = vadd.f32 %v336_v18, %v96_v19  ;;  %v381_v21 = vpop.f32.mrb[1].mxu0 }
  0xed   :  { %v99_v22 = vpop.f32.mrb[2].mxu0 }
  0xee   :  { %v102_v23 = vmax.f32 %v97_v20, 0.0  ;;  %v382_v24 = vpop.f32.mrb[3].mxu0 }
  0xf0   :  { %v103_v25 = vpack.c.bf16 %v102_v23, %v102_v23 }
  0xf2   :  { %400 = vmatmul.mubr.bf16.vlgmr.msra.gmra.mrb[0].mxu1 %v103_v25 }
 0x1c5   :  { %v209_v29 = vpop.f32.mrb[0].mxu1 }
 0x1c6   :  { %v210_v30 = vadd.f32 %v339_v28, %v209_v29  ;;  %v401_v31 = vpop.f32.mrb[1].mxu1 }
 0x1c7   :  { %v212_v32 = vpop.f32.mrb[2].mxu1 }
 0x1c8   :  { %v215_v33 = vmax.f32 %v210_v30, 0.0  ;;  %v402_v34 = vpop.f32.mrb[3].mxu1 }
 0x1ca   :  { %v216_v35 = vpack.c.bf16 %v215_v33, %v215_v33 }
 0x1cc   :  { %420 = vmatmul.mubr.bf16.vlgmr.msra.gmra.mrb[4].mxu0 %v216_v35 }
 0x29f   :  { %v322_v37 = vpop.f32.mrb[4].mxu0 }
 0x2a0   :  { %v323_v38 = vadd.f32 %v348_v36, %v322_v37  ;;  %v421_v39 = vpop.f32.mrb[5].mxu0 }
 0x2a1   :  { %v325_v40 = vpop.f32.mrb[6].mxu0 }
 0x2a2   :  { %445 = vtanh.f32 %v323_v38  ;;  %v422_v41 = vpop.f32.mrb[7].mxu0 }
 0x2ac   :  { %v446_v42 = vpop.eup %445 }
 0x2ad   :  { %330 = vst.msk [vmem:[%s618_s7] sm:$0xff] %vm329_vm2, %v446_v42 }
 0x2ae   :  { %335 = vsyncpa [#allocation3], 1 }

</bundles_post_ra>
